<compile_context>
chip_gen: v5e
topology: v5e:2x2
jax: 0.10.0
libtpu: 0.0.40
codegen_flags: <defaults>
</compile_context>

<pallas_src>
import jax
import jax.numpy as jnp
from jax.experimental import pallas as pl
from jax.experimental.pallas import tpu as pltpu

LANE = 128
MAX_BLOCK_ROWS = 1024  # 3 inputs x 2 buffers x 512 KiB = 3 MiB VMEM -> safe on v5e/v7x too.


def _depth_loss_kernel(p_ref, g_ref, m_ref, out_ref, acc_ref):
    """Grid = (num_parts, steps); acc_ref is a per-core VMEM (3,8,128) f32
    vector accumulator: [sum(|p-g|*m), sum(|p-g|), sum(m)] per (sublane,lane)."""
    i = pl.program_id(1)

    @pl.when(i == 0)
    def _init():
        acc_ref[...] = jnp.zeros_like(acc_ref)

    p = p_ref[...].astype(jnp.float32)
    g = g_ref[...].astype(jnp.float32)
    m = m_ref[...].astype(jnp.float32)

    d = jnp.abs(p - g)  # |p - g|; mask factors out since m in [0,1].

    block_rows = p.shape[0]

    def fold(x):
        # (block_rows,128) -> (block_rows//8, 8, 128) is tile-aligned (free);
        # the axis-0 sum is pure VPU adds, no cross-lane XLU work per step.
        return jnp.sum(x.reshape(block_rows // 8, 8, LANE), axis=0)

    acc_ref[0] += fold(d * m)
    acc_ref[1] += fold(d)
    acc_ref[2] += fold(m)

    @pl.when(i == pl.num_programs(1) - 1)
    def _finalize():
        # Write this core/part's partial sums as a lane-dense (3,8,128) block.
        out_ref[0] = acc_ref[...]


def _choose_block_rows(rows_per_part):
    """Largest multiple of 8 that divides rows_per_part and is <= MAX_BLOCK_ROWS."""
    best = 8
    d = 8
    limit = min(MAX_BLOCK_ROWS, rows_per_part)
    while d <= limit:
        if rows_per_part % d == 0:
            best = d
        d += 8
    return best


def depth_loss(pred_flows, gt_flows, masks, frames=None):
    """Pallas implementation of DepthLoss.forward (`frames` unused, as in the
    reference module). Inputs may be any float dtype; mask any numeric dtype."""
    del frames
    B = pred_flows.shape[0]
    total = int(pred_flows.size)
    assert total % (8 * LANE) == 0, "kernel assumes B*C*H*W divisible by 8*128"
    # TODO(synk): add tail-masking for shapes not divisible by (8, 128).
    rows = total // LANE

    # Two parallel parts (one per TensorCore on v7x) when the split keeps each
    # part a multiple of 8 rows; otherwise a single sequential part.
    num_parts = 2 if rows % 16 == 0 else 1
    rows_per_part = rows // num_parts
    block_rows = _choose_block_rows(rows_per_part)
    steps = rows_per_part // block_rows

    # No upcast in the wrapper: stream native dtypes, cast inside the kernel.
    p2 = pred_flows.reshape(rows, LANE)
    g2 = gt_flows.reshape(rows, LANE)
    m2 = masks.reshape(rows, LANE)

    in_spec = pl.BlockSpec((block_rows, LANE), lambda c, i: (c * steps + i, 0))
    out_spec = pl.BlockSpec((1, 3, 8, LANE), lambda c, i: (c, 0, 0, 0))

    partials = pl.pallas_call(
        _depth_loss_kernel,
        out_shape=jax.ShapeDtypeStruct((num_parts, 3, 8, LANE), jnp.float32),
        grid_spec=pltpu.PrefetchScalarGridSpec(
            num_scalar_prefetch=0,
            grid=(num_parts, steps),
            in_specs=[in_spec, in_spec, in_spec],
            out_specs=out_spec,
            scratch_shapes=[pltpu.VMEM((3, 8, LANE), jnp.float32)],
        ),
        compiler_params=pltpu.CompilerParams(
            # Reduction axis stays "arbitrary" (per-core scratch accumulator);
            # the leading part axis is safe to shard across cores because each
            # part owns its own output block and its own scratch instance.
            dimension_semantics=("parallel", "arbitrary")),
    )(p2, g2, m2)

    # Final combine: tiny, done in plain JAX.
    sums = jnp.sum(partials, axis=(0, 2, 3))  # [sum(|d|*m), sum(|d|), sum(m)]
    s_dm, s_d, s_m = sums[0], sums[1], sums[2]
    # mean(|d|*m)/mean(m) + mean(|d|*(1-m))/mean(1-m)  (total elems cancel)
    # NOTE: all-zero / all-one masks give Inf/NaN, matching the PyTorch ref.
    l1 = s_dm / s_m + (s_d - s_dm) / (float(total) - s_m)
    return B * l1


def depth_loss_ref(pred_flows, gt_flows, masks):
    """Pure-JAX reference mirroring the PyTorch forward."""
    m = masks.astype(jnp.float32)
    im = 1.0 - m
    p = pred_flows.astype(jnp.float32)
    g = gt_flows.astype(jnp.float32)
    l1 = (jnp.mean(jnp.abs(p * m - g * m)) / jnp.mean(m)
          + jnp.mean(jnp.abs(p * im - g * im)) / jnp.mean(im))
    return pred_flows.shape[0] * l1


if __name__ == "__main__":
    key = jax.random.PRNGKey(0)
    k1, k2, k3 = jax.random.split(key, 3)

    B, C, H, W = 2, 4, 16, 16  # 2*4*16*16 = 2048 elements = 16 rows x 128 lanes
    pred = jax.random.normal(k1, (B, C, H, W), dtype=jnp.float32)
    gt = jax.random.normal(k2, (B, C, H, W), dtype=jnp.float32)
    masks = jax.random.bernoulli(k3, p=0.3, shape=(B, C, H, W)).astype(jnp.float32)
    frames = jnp.zeros((B, 3, H, W), dtype=jnp.float32)  # unused, as in PyTorch

    loss = depth_loss(pred, gt, masks, frames)
    loss = jax.block_until_ready(loss)

    ref = depth_loss_ref(pred, gt, masks)
    assert jnp.allclose(loss, ref, rtol=1e-5, atol=1e-5), (loss, ref)

    print("KERNEL_OK")
</pallas_src>

<mosaic_0001>
module attributes {stable_mosaic.version = 11 : i64} {
  func.func @_depth_loss_kernel(%arg0: i32, %arg1: i32, %arg2: memref<8x128xf32, #tpu.memory_space<vmem>>, %arg3: memref<8x128xf32, #tpu.memory_space<vmem>>, %arg4: memref<8x128xf32, #tpu.memory_space<vmem>>, %arg5: memref<1x3x8x128xf32, #tpu.memory_space<vmem>>, %arg6: memref<3x8x128xf32, #tpu.memory_space<vmem>>) attributes {dimension_semantics = [#tpu.dimension_semantics<parallel>, #tpu.dimension_semantics<arbitrary>], iteration_bounds = array<i64: 2, 1>, scalar_prefetch = 0 : i64, scratch_operands = 1 : i64, tpu.core_type = #tpu.core_type<tc>, window_params = [{transform_indices = @transform_0, window_bounds = array<i64: 8, 128>}, {transform_indices = @transform_1, window_bounds = array<i64: 8, 128>}, {transform_indices = @transform_2, window_bounds = array<i64: 8, 128>}, {transform_indices = @transform_3, window_bounds = array<i64: 1, 3, 8, 128>}]} {
    %c0_i32 = arith.constant 0 : i32
    %0 = arith.cmpi eq, %arg1, %c0_i32 : i32
    %1 = arith.extui %0 : i1 to i32
    %c0_i32_0 = arith.constant 0 : i32
    %2 = arith.cmpi ne, %1, %c0_i32_0 : i32
    scf.if %2 {
      %cst_26 = arith.constant 0.000000e+00 : f32
      %36 = vector.broadcast %cst_26 : f32 to vector<3x8x128xf32>
      %c0_27 = arith.constant 0 : index
      %c0_28 = arith.constant 0 : index
      %c0_29 = arith.constant 0 : index
      %37 = vector.load %arg6[%c0_27, %c0_28, %c0_29] : memref<3x8x128xf32, #tpu.memory_space<vmem>>, vector<3x8x128xf32>
      tpu.vector_store %arg6[%c0_27, %c0_28, %c0_29], %36 {strides = array<i32>} : memref<3x8x128xf32, #tpu.memory_space<vmem>>, vector<3x8x128xf32>,
    } else {
    }
    %c0 = arith.constant 0 : index
    %c0_1 = arith.constant 0 : index
    %3 = vector.load %arg2[%c0, %c0_1] : memref<8x128xf32, #tpu.memory_space<vmem>>, vector<8x128xf32>
    %c0_2 = arith.constant 0 : index
    %c0_3 = arith.constant 0 : index
    %4 = vector.load %arg3[%c0_2, %c0_3] : memref<8x128xf32, #tpu.memory_space<vmem>>, vector<8x128xf32>
    %c0_4 = arith.constant 0 : index
    %c0_5 = arith.constant 0 : index
    %5 = vector.load %arg4[%c0_4, %c0_5] : memref<8x128xf32, #tpu.memory_space<vmem>>, vector<8x128xf32>
    %6 = arith.subf %3, %4 : vector<8x128xf32>
    %7 = math.absf %6 : vector<8x128xf32>
    %c0_6 = arith.constant 0 : index
    %c0_7 = arith.constant 0 : index
    %c0_8 = arith.constant 0 : index
    %8 = vector.load %arg6[%c0_6, %c0_7, %c0_8] : memref<3x8x128xf32, #tpu.memory_space<vmem>>, vector<1x8x128xf32>
    %9 = vector.shape_cast %8 : vector<1x8x128xf32> to vector<8x128xf32>
    %10 = arith.mulf %7, %5 : vector<8x128xf32>
    %11 = vector.shape_cast %10 : vector<8x128xf32> to vector<1x8x128xf32>
    %cst = arith.constant dense<0.000000e+00> : vector<8x128xf32>
    %12 = vector.multi_reduction <add>, %11, %cst [0] : vector<1x8x128xf32> to vector<8x128xf32>
    %13 = arith.addf %9, %12 : vector<8x128xf32>
    %c0_9 = arith.constant 0 : index
    %c0_10 = arith.constant 0 : index
    %c0_11 = arith.constant 0 : index
    %14 = vector.load %arg6[%c0_9, %c0_10, %c0_11] : memref<3x8x128xf32, #tpu.memory_space<vmem>>, vector<1x8x128xf32>
    %15 = vector.shape_cast %14 : vector<1x8x128xf32> to vector<8x128xf32>
    %16 = vector.shape_cast %13 : vector<8x128xf32> to vector<1x8x128xf32>
    tpu.vector_store %arg6[%c0_9, %c0_10, %c0_11], %16 {strides = array<i32>} : memref<3x8x128xf32, #tpu.memory_space<vmem>>, vector<1x8x128xf32>,
    %c1 = arith.constant 1 : index
    %c0_12 = arith.constant 0 : index
    %c0_13 = arith.constant 0 : index
    %17 = vector.load %arg6[%c1, %c0_12, %c0_13] : memref<3x8x128xf32, #tpu.memory_space<vmem>>, vector<1x8x128xf32>
    %18 = vector.shape_cast %17 : vector<1x8x128xf32> to vector<8x128xf32>
    %19 = vector.shape_cast %7 : vector<8x128xf32> to vector<1x8x128xf32>
    %cst_14 = arith.constant dense<0.000000e+00> : vector<8x128xf32>
    %20 = vector.multi_reduction <add>, %19, %cst_14 [0] : vector<1x8x128xf32> to vector<8x128xf32>
    %21 = arith.addf %18, %20 : vector<8x128xf32>
    %c1_15 = arith.constant 1 : index
    %c0_16 = arith.constant 0 : index
    %c0_17 = arith.constant 0 : index
    %22 = vector.load %arg6[%c1_15, %c0_16, %c0_17] : memref<3x8x128xf32, #tpu.memory_space<vmem>>, vector<1x8x128xf32>
    %23 = vector.shape_cast %22 : vector<1x8x128xf32> to vector<8x128xf32>
    %24 = vector.shape_cast %21 : vector<8x128xf32> to vector<1x8x128xf32>
    tpu.vector_store %arg6[%c1_15, %c0_16, %c0_17], %24 {strides = array<i32>} : memref<3x8x128xf32, #tpu.memory_space<vmem>>, vector<1x8x128xf32>,
    %c2 = arith.constant 2 : index
    %c0_18 = arith.constant 0 : index
    %c0_19 = arith.constant 0 : index
    %25 = vector.load %arg6[%c2, %c0_18, %c0_19] : memref<3x8x128xf32, #tpu.memory_space<vmem>>, vector<1x8x128xf32>
    %26 = vector.shape_cast %25 : vector<1x8x128xf32> to vector<8x128xf32>
    %27 = vector.shape_cast %5 : vector<8x128xf32> to vector<1x8x128xf32>
    %cst_20 = arith.constant dense<0.000000e+00> : vector<8x128xf32>
    %28 = vector.multi_reduction <add>, %27, %cst_20 [0] : vector<1x8x128xf32> to vector<8x128xf32>
    %29 = arith.addf %26, %28 : vector<8x128xf32>
    %c2_21 = arith.constant 2 : index
    %c0_22 = arith.constant 0 : index
    %c0_23 = arith.constant 0 : index
    %30 = vector.load %arg6[%c2_21, %c0_22, %c0_23] : memref<3x8x128xf32, #tpu.memory_space<vmem>>, vector<1x8x128xf32>
    %31 = vector.shape_cast %30 : vector<1x8x128xf32> to vector<8x128xf32>
    %32 = vector.shape_cast %29 : vector<8x128xf32> to vector<1x8x128xf32>
    tpu.vector_store %arg6[%c2_21, %c0_22, %c0_23], %32 {strides = array<i32>} : memref<3x8x128xf32, #tpu.memory_space<vmem>>, vector<1x8x128xf32>,
    %c0_i32_24 = arith.constant 0 : i32
    %33 = arith.cmpi eq, %arg1, %c0_i32_24 : i32
    %34 = arith.extui %33 : i1 to i32
    %c0_i32_25 = arith.constant 0 : i32
    %35 = arith.cmpi ne, %34, %c0_i32_25 : i32
    scf.if %35 {
      %c0_26 = arith.constant 0 : index
      %c0_27 = arith.constant 0 : index
      %c0_28 = arith.constant 0 : index
      %36 = vector.load %arg6[%c0_26, %c0_27, %c0_28] : memref<3x8x128xf32, #tpu.memory_space<vmem>>, vector<3x8x128xf32>
      %c0_29 = arith.constant 0 : index
      %c0_30 = arith.constant 0 : index
      %c0_31 = arith.constant 0 : index
      %c0_32 = arith.constant 0 : index
      %37 = vector.load %arg5[%c0_29, %c0_30, %c0_31, %c0_32] : memref<1x3x8x128xf32, #tpu.memory_space<vmem>>, vector<1x3x8x128xf32>
      %38 = vector.shape_cast %37 : vector<1x3x8x128xf32> to vector<3x8x128xf32>
      %39 = vector.shape_cast %36 : vector<3x8x128xf32> to vector<1x3x8x128xf32>
      tpu.vector_store %arg5[%c0_29, %c0_30, %c0_31, %c0_32], %39 {strides = array<i32>} : memref<1x3x8x128xf32, #tpu.memory_space<vmem>>, vector<1x3x8x128xf32>,
    } else {
    }
    return
  }
  func.func @transform_0(%arg0: i32, %arg1: i32) -> (i32, i32) {
    %c1_i32 = arith.constant 1 : i32
    %0 = arith.muli %arg0, %c1_i32 : i32
    %1 = arith.addi %0, %arg1 : i32
    %c0_i32 = arith.constant 0 : i32
    %c0_i32_0 = arith.constant 0 : i32
    return %1, %c0_i32 : i32, i32
  }
  func.func @transform_1(%arg0: i32, %arg1: i32) -> (i32, i32) {
    %c1_i32 = arith.constant 1 : i32
    %0 = arith.muli %arg0, %c1_i32 : i32
    %1 = arith.addi %0, %arg1 : i32
    %c0_i32 = arith.constant 0 : i32
    %c0_i32_0 = arith.constant 0 : i32
    return %1, %c0_i32 : i32, i32
  }
  func.func @transform_2(%arg0: i32, %arg1: i32) -> (i32, i32) {
    %c1_i32 = arith.constant 1 : i32
    %0 = arith.muli %arg0, %c1_i32 : i32
    %1 = arith.addi %0, %arg1 : i32
    %c0_i32 = arith.constant 0 : i32
    %c0_i32_0 = arith.constant 0 : i32
    return %1, %c0_i32 : i32, i32
  }
  func.func @transform_3(%arg0: i32, %arg1: i32) -> (i32, i32, i32, i32) {
    %c0_i32 = arith.constant 0 : i32
    %c0_i32_0 = arith.constant 0 : i32
    %c0_i32_1 = arith.constant 0 : i32
    %c0_i32_2 = arith.constant 0 : i32
    return %arg0, %c0_i32, %c0_i32_0, %c0_i32_1 : i32, i32, i32, i32
  }
}

</mosaic_0001>

<bundles_post_ra>
// kernel: tpu_custom_call.1
= control target key start
LH: loop header
LB: loop body
LE: loop exit
PB: predicated region body
PF: predicated region fallthrough
CT: control target
= control target key end

     0   :  { %s912_s0 = inlined_call_operand.hbm [shape: f32[16,128], index: 0, kind: input, shape index: {}]   ;;  %s913_s1 = inlined_call_operand.hbm [shape: f32[16,128], index: 1, kind: input, shape index: {}]   ;;  %s914_s2 = inlined_call_operand.hbm [shape: f32[16,128], index: 2, kind: input, shape index: {}]   ;;  %s915_s3 = inlined_call_operand.hbm [shape: f32[2,3,8,128], index: 3, kind: output, shape index: {}]  }
   0x1   :  { %918 = sst [smem:[#allocation16_spill]] %s913_s1 }
   0x2   :  { %8 = vsyncpa [#allocation4], 0 }
   0x3   :  { %10 = vsyncpa [#allocation4 + $0x1], 0 }
   0x4   :  { %11 = vsyncpa [#allocation7], 0 }
   0x5   :  { %13 = vsyncpa [#allocation7 + $0x1], 0 }
   0x6   :  { %14 = vsyncpa [#allocation5], 0 }
   0x7   :  { %16 = vsyncpa [#allocation5 + $0x1], 0  ;;  %s759_s12 = smov 0   ;;  %s761_s13 = smov 0  }
   0x8   :  { %s763_s14 = smov 0   ;;  %s765_s15 = smov 0  }
   0x9   :  { %s767_s16 = smov 0   ;;  %s769_s17 = smov 0  }
   0xa LB: > { %919 = sst [smem:[#allocation13_spill]] %s731_s16  ;;  %s790_s18 = sadd.s32 4294967295, %s735_s17   ;;  %s735_s17 = sphi %s769_s17, %s22_s17   ;;  %s731_s16 = sphi %s767_s16, %s931_s16   ;;  %s727_s15 = sphi %s765_s15, %s930_s15   ;;  %s723_s14 = sphi %s763_s14, %s934_s14   ;;  %s719_s13 = sphi %s761_s13, %s933_s13   ;;  %s715_s12 = sphi %s759_s12, %s932_s12  }
   0xb   : > { %s467_s19 = sadd.s32 4294967294, %s735_s17   ;;  %s34_s20 = sadd.s32 1, %s731_s16 }
   0xc   : > { %s43_s21 = sadd.s32 1, %s723_s14  ;;  %p36_p0 = scmp.ge.s32.totalorder %s34_s20, 2 }
   0xd   : > { %p50_p1 = scmp.ne.s32.totalorder %s723_s14, %s719_s13  ;;  %p51_p2 = scmp.eq.s32.totalorder %s735_s17, 0 }
   0xe   : > { %p56_p3 = scmp.ne.s32.totalorder %s719_s13, %s715_s12  ;;  %s936_s20 = smov (%p36_p0, %s34_s20), 0 }
   0xf   : > { %920 = sst [smem:[#allocation14_spill]] %s936_s20  ;;  %p802_p4 = por %p51_p2, %p50_p1 }
  0x10   : > { %p57_p5 = scmp.eq.s32.totalorder %s790_s18, 0  ;;  %s40_s23 = ssub.s32 %s731_s16, %s936_s20 }
  0x11   : > { %p136_p6 = scmp.eq.s32.totalorder %s790_s18, 1  ;;  %p41_p7 = scmp.eq.s32.totalorder %s40_s23, 0 }
  0x12   : > { %p810_p8 = por %p57_p5, %p56_p3  ;;  %p142_p10 = scmp.eq.s32.totalorder %s467_s19, 1 }
  0x13   : > { %p814_p9 = por %p136_p6, %p50_p1  ;;  %p469_p12 = scmp.ge.s32.totalorder %s735_s17, 2 }
  0x14   : > { %s819_s26 = scalar_select %p41_p7, %s723_s14, %s43_s21  }
  0x15   : > { %p821_p11 = por %p142_p10, %p56_p3  ;;  %p507_p13 = scmp.lt.s32.totalorder %s735_s17, 2 }
  0x16   : > { %924 = sst [smem:[#allocation15_spill]] %s819_s26  ;;  %s162_s28 = sand.u32 1, %s723_s14  }
  0x17   : > { %s470_s29 = sshll.u32 %s162_s28, 3  ;;  %s471_s30 = sshll.u32 %s731_s16, 3 }
  0x18   : > { %p831_p0 = pnand %p507_p13, %p802_p4  ;;  %s182_s5 = sand.u32 1, %s735_s17  }
  0x19   : > { %s927_s1 = sld [smem:[#allocation16_spill]]  ;;  %s186_s10 = scalar_lea.vmem [#allocation6], %s470_s29 }
  0x1a   : > { %s195_s11 = sshll.u32 %s186_s10, 4  ;;  %s183_s19 = scalar_lea.sflag [#allocation7], %s182_s5  ;;  %s196_s11 = int_to_ptr.vmem [resolvable:$true] %s195_s11 }
  0x1b   : > { %p476_p1 = scmp.ge.s32.totalorder %s735_s17, 1  ;;  %p220_p2 = scmp.lt.s32.totalorder %s735_s17, 3 }
  0x1c   : > { %s171_s6 = scalar_lea.hbm %s912_s0, %s471_s30  ;;  %s163_s10 = scalar_lea.sflag [#allocation4], %s162_s28 }
  0x1d   : > { %p843_p3 = pnand %p476_p1, %p220_p2  ;;  %s173_s7 = sshll.u32 %s171_s6, 4  ;;  %s174_s7 = int_to_ptr.hbm [resolvable:$true] %s173_s7 }
  0x1e   : > { %s206_s16 = scalar_lea.vmem [#allocation8], %s470_s29  ;;  %s860_s22 = sand.u32 (!%p843_p3), 1, %s719_s13  }
  0x1f   : > { %s191_s8 = scalar_lea.hbm %s927_s1, %s471_s30  ;;  %s215_s26 = sshll.u32 %s206_s16, 4  ;;  %s216_s26 = int_to_ptr.vmem [resolvable:$true] %s215_s26 }
  0x20   : > { %s193_s9 = sshll.u32 %s191_s8, 4  ;;  %s166_s8 = scalar_lea.vmem [#allocation3], %s470_s29  ;;  %s194_s9 = int_to_ptr.hbm [resolvable:$true] %s193_s9 }
  0x21   : > { %499 = dma.hbm_to_vmem [thread:$0]  (!%p831_p0), %s194_s9, 128, %s196_s11, %s183_s19  }
  0x22   : > { %s175_s1 = sshll.u32 %s166_s8, 4  ;;  %s211_s11 = scalar_lea.hbm %s914_s2, %s471_s30  ;;  %s176_s1 = int_to_ptr.vmem [resolvable:$true] %s175_s1 }
  0x23   : > { %496 = dma.hbm_to_vmem [thread:$0]  (!%p831_p0), %s174_s7, 128, %s176_s1, %s163_s10  }
  0x24   : > { %s213_s20 = sshll.u32 %s211_s11, 4  ;;  %224 = sbr.rel (%p843_p3) target bundleno = 63 (0x3f), region = 32  ;;  %s214_s20 = int_to_ptr.hbm [resolvable:$true] %s213_s20 }
  0x25   : > { %502 = dma.hbm_to_vmem [thread:$0]  (!%p831_p0), %s214_s20, 128, %s216_s26, %s183_s19  }
  0x26   : > { %s477_s1 = sshll.u32 (!%p843_p3), %s860_s22, 3  ;;  %s227_s28 = scalar_lea.sflag (!%p843_p3), [#allocation4], %s860_s22 }
  0x27   : > { %s230_s23 = scalar_lea.vmem (!%p843_p3), [#allocation3], %s477_s1 }
  0x29   : > { %702 = dma.done.wait (%p810_p8), %s227_s28, 128  }
  0x2a   : > { %704 = vsyncadd (%p810_p8), %s227_s28, 4294967168  ;;  %s236_s16 = sand.u32 1, %s790_s18   ;;  %s240_s26 = scalar_lea.vmem [#allocation6], %s477_s1 }
  0x2b   : > { %s237_s20 = scalar_lea.sflag [#allocation7], %s236_s16 }
  0x2c   : > { %706 = dma.done.wait (%p810_p8), %s237_s20, 256  }
  0x2d   : > { %708 = vsyncadd (%p810_p8), %s237_s20, 4294967040  ;;  %s483_s29 = smul.u32 24, %s860_s22  ;;  %v294_v0 = vld [vmem:[%s230_s23] sm:$0xff]  ;;  %v295_v1 = vld [vmem:[%s240_s26] sm:$0xff]  ;;  %s250_s6 = scalar_lea.vmem [#allocation8], %s477_s1 }
  0x2e   : > { %s484_s30 = smul.u32 24, %s727_s15  ;;  %v296_v2 = vld [vmem:[%s250_s6] sm:$0xff]  ;;  %v297_v3 = vsub.f32 %v294_v0, %v295_v1  ;;  %s324_s15 = scalar_lea.sflag [#allocation5], %s860_s22 }
  0x2f   : > { %s283_s18 = scalar_lea.vmem [#allocation9], %s483_s29  ;;  %s669_s11 = scalar_lea.hbm %s915_s3, 48 }
  0x30   : > { %s335_s21 = scalar_lea.hbm %s915_s3, %s484_s30  ;;  %s336_s7 = sshll.u32 %s283_s18, 4  ;;  %322 = vst [vmem:[%s283_s18 + $0x10] sm:$0xff] %v296_v2  ;;  %v298_v4 = vand.u32 2147483647, %v297_v3  ;;  %s337_s7 = int_to_ptr.vmem [resolvable:$true] %s336_s7 }
  0x31   : > { %s338_s24 = sshll.u32 %s335_s21, 4  ;;  %s339_s24 = int_to_ptr.hbm [resolvable:$true] %s338_s24 }
  0x32   : > { %v300_v5 = vmul.f32 %v298_v4, %v296_v2  ;;  %321 = vst [vmem:[%s283_s18 + $0x8] sm:$0xff] %v298_v4  ;;  %s663_s8 = sshra.s32 %s339_s24, 4  ;;  %s664_s8 = int_to_ptr.hbm [resolvable:$true] %s663_s8 }
  0x33   : > { %s665_s10 = scalar_lea.hbm %s664_s8, 24  ;;  %p670_p7 = scmp.lt.s32.totalorder %s664_s8, %s915_s3 }
  0x34   : > { %320 = vst [vmem:[%s283_s18] sm:$0xff] %v300_v5  ;;  %p666_p4 = scmp.ne.s32.totalorder %s664_s8, %s665_s10  ;;  %p671_p8 = scmp.lt.s32.totalorder %s669_s11, %s665_s10 }
  0x36   : > { %p667_p5 = pnand %p666_p4, %p814_p9  ;;  %p672_p10 = por %p671_p8, %p670_p7 }
  0x38   : > { %p668_p6 = pneg %p667_p5 }
  0x3a   : > { %p673_p13 = pnand %p672_p10, %p668_p6 }
  0x3c   : > { %676 = shalt.err (!%p673_p13)
}
  0x3d   : > { %s737_s22 = smov 128   ;;  %s738_s23 = smov 8  }
  0x3e   : > { %491 = dma.vmem_to_hbm [thread:$0]  (%p814_p9), %s337_s7, 384, %s339_s24, %s324_s15, %s737_s22, %s737_s22, %s738_s23  }
  0x3f PF: > { %s353_s16 = sand.u32 1, %s715_s12   ;;  %p504_p0 = pnand %p469_p12, %p821_p11 }
  0x40   : > { %s354_s20 = scalar_lea.sflag [#allocation5], %s353_s16 }
  0x41   : > { %p505_p1 = pneg %p504_p0 }
  0x43   : > { %710 = dma.done.wait (%p505_p1), %s354_s20, 384  }
  0x44   : > { %712 = vsyncadd (%p505_p1), %s354_s20, 4294966912  ;;  %s22_s17 = sadd.s32 1, %s735_s17   ;;  %s929_s26 = sld [smem:[#allocation15_spill]] }
  0x45   : > { %p19_p2 = scmp.ge.s32.totalorder %s22_s17, 4   ;;  %s930_s15 = sld [smem:[#allocation13_spill]] }
  0x46   : > { %s931_s16 = sld [smem:[#allocation14_spill]]  ;;  %s932_s12 = smov %s719_s13 }
  0x47   : > { %s933_s13 = smov %s723_s14  ;;  %21 = sbr.rel (!%p19_p2) target bundleno = 10 (0xa), region = 111 }
  0x4a   : > { %s934_s14 = smov %s929_s26 }
  0x4c   :  { %360 = vsyncpa [#allocation4], 1 }
  0x4d   :  { %362 = vsyncpa [#allocation4 + $0x1], 1 }
  0x4e   :  { %363 = vsyncpa [#allocation7], 1 }
  0x4f   :  { %365 = vsyncpa [#allocation7 + $0x1], 1 }
  0x50   :  { %366 = vsyncpa [#allocation5], 1 }
  0x51   :  { %368 = vsyncpa [#allocation5 + $0x1], 1 }

</bundles_post_ra>
